<compile_context>
chip_gen: v5e
topology: v5e:2x2
jax: 0.10.0
libtpu: 0.0.40
codegen_flags: <defaults>
</compile_context>

<pallas_src>
import functools

import jax
import jax.numpy as jnp
from jax.experimental import pallas as pl
from jax.experimental.pallas import tpu as pltpu

LN_EPS = 1e-5  # PyTorch nn.LayerNorm default


def _round_up(x, m):
    return (x + m - 1) // m * m


# --------------------------------------------------------------------------
# Probe: does this Pallas build accept pipeline_mode=pl.Buffered(1)?
# (Used to single-buffer the constant operands; falls back gracefully.)
# --------------------------------------------------------------------------
def _probe_kernel(c_ref, x_ref, o_ref):
    o_ref[...] = x_ref[...] + c_ref[...]


@functools.lru_cache(maxsize=1)
def _buffered_one_supported():
    try:
        x = jnp.zeros((16, 128), jnp.float32)
        c = jnp.zeros((8, 128), jnp.float32)
        fn = pl.pallas_call(
            _probe_kernel,
            out_shape=jax.ShapeDtypeStruct((16, 128), jnp.float32),
            grid=(2,),
            in_specs=[
                pl.BlockSpec((8, 128), lambda i: (0, 0),
                             pipeline_mode=pl.Buffered(1)),
                pl.BlockSpec((8, 128), lambda i: (i, 0)),
            ],
            out_specs=pl.BlockSpec((8, 128), lambda i: (i, 0)),
        )
        jax.block_until_ready(fn(c, x))
        return True
    except Exception:
        return False


def _vmem_limit_bytes(ts, E, Dp, compute_dtype, single_buffer_consts):
    """Rough pipelined VMEM estimate with headroom, generation-aware cap."""
    cdb = jnp.dtype(compute_dtype).itemsize
    kbuf = 1 if single_buffer_consts else 2
    est = (
        2 * ts * E * cdb          # token rows (double-buffered)
        + 2 * ts * E * cdb        # positional rows
        + 2 * ts * 128 * 4        # segment ids (lane-padded int32)
        + kbuf * 8 * E * cdb      # segment table (sublane-padded)
        + kbuf * E * Dp * cdb     # linear weight
        + kbuf * 8 * Dp * 4       # bias/gamma/beta slab (sublane-padded)
        + 2 * ts * Dp * 4         # output tile (<= f32)
    )
    est = est * 3 // 2            # headroom
    try:
        phys = pltpu.get_tpu_info().vmem_capacity_bytes
    except Exception:
        phys = 128 * 1024 * 1024
    if phys <= 64 * 1024 * 1024:          # v7x-class: leave room for scratch
        cap = 48 * 1024 * 1024
    else:                                  # v5e / v6e: 128 MiB physical
        cap = 100 * 1024 * 1024
    return int(min(max(est, 32 * 1024 * 1024), cap))


# --------------------------------------------------------------------------
# Kernel
# --------------------------------------------------------------------------
def _embedding_kernel(*refs, d_valid, has_segment):
    if has_segment:
        tok_ref, pos_ref, segid_ref, segtab_ref, w_ref, p_ref, o_ref = refs
    else:
        tok_ref, pos_ref, w_ref, p_ref, o_ref = refs

    # ---- sum of token + positional (+ segment) embeddings in f32 ----------
    x = tok_ref[...].astype(jnp.float32) + pos_ref[...].astype(jnp.float32)

    if has_segment:
        ids = segid_ref[...]                               # (ts, 1) int32
        tab = segtab_ref[...].astype(jnp.float32)          # (3, E)
        t0, t1, t2 = tab[0:1, :], tab[1:2, :], tab[2:3, :]
        # NOTE: ids outside [0,3) map to segment 0 (reference clamps instead).
        x = x + jnp.where(ids == 1, t1, jnp.where(ids == 2, t2, t0))

    # ---- Linear: y = x @ W + b on the MXU (compute_dtype in, f32 acc) -----
    y = jnp.dot(x.astype(w_ref.dtype), w_ref[...],
                preferred_element_type=jnp.float32)        # (ts, Dp)
    bias = p_ref[0:1, :]
    gamma = p_ref[1:2, :]
    beta = p_ref[2:3, :]
    y = y + bias

    # ---- LayerNorm over the first d_valid columns --------------------------
    # Padded weight/bias columns are exactly 0, so padded y columns are 0 and
    # the one-pass E[y^2] - mean^2 formulation needs no column mask.
    inv_d = 1.0 / d_valid
    mean = jnp.sum(y, axis=-1, keepdims=True) * inv_d
    var = jnp.sum(y * y, axis=-1, keepdims=True) * inv_d - mean * mean
    var = jnp.maximum(var, 0.0)
    y_hat = (y - mean) * jax.lax.rsqrt(var + LN_EPS)
    # padded gamma/beta are 0, so padded output columns are exactly 0
    o_ref[...] = (y_hat * gamma + beta).astype(o_ref.dtype)


# --------------------------------------------------------------------------
# Wrapper
# --------------------------------------------------------------------------
@functools.partial(
    jax.jit,
    static_argnames=("seq_tile", "compute_dtype", "out_dtype",
                     "single_buffer_consts"))
def _forward(params, sequence, sequence_segment, *, seq_tile, compute_dtype,
             out_dtype, single_buffer_consts):
    tok_table = params["token_table"]      # (V, E)
    seg_table = params["segment_table"]    # (3, E)
    pe = params["pos_encoding"]            # (max_len, E)
    w = params["linear_w"]                 # (E, D)
    b = params["linear_b"]                 # (D,)
    gamma = params["ln_gamma"]             # (D,)
    beta = params["ln_beta"]               # (D,)

    B, S = sequence.shape
    E = tok_table.shape[1]
    D = w.shape[1]
    has_segment = sequence_segment is not None

    # ---- tiling (sublane granule 8 for f32, 16 for bf16; lane granule 128) -
    itemsize = jnp.dtype(compute_dtype).itemsize
    granule = 8 if itemsize >= 4 else (16 if itemsize == 2 else 32)
    ts = min(int(seq_tile), _round_up(S, granule))
    ts = max(granule, _round_up(ts, granule))
    Sp = _round_up(S, ts)                  # padded sequence length
    Dp = _round_up(D, 128)                 # lane-dense output width

    # ---- glue: pad the TINY id tensors, then gather -> (B, Sp, E) ----------
    seq_ids = sequence.astype(jnp.int32)
    if Sp != S:
        seq_ids = jnp.pad(seq_ids, ((0, 0), (0, Sp - S)))
    tok_emb = jnp.take(tok_table, seq_ids, axis=0).astype(compute_dtype)

    pos_tab = pe[:S].astype(compute_dtype)                 # (S, E)
    if Sp != S:
        pos_tab = jnp.pad(pos_tab, ((0, Sp - S), (0, 0)))  # (Sp, E)

    if has_segment:
        seg_ids = sequence_segment.astype(jnp.int32)
        if Sp != S:
            seg_ids = jnp.pad(seg_ids, ((0, 0), (0, Sp - S)))
        seg_ids = seg_ids[..., None]                       # (B, Sp, 1)
        seg_tab = seg_table.astype(compute_dtype)          # (3, E)

    w_p = w.astype(compute_dtype)                          # (E, D)
    p_slab = jnp.stack([b, gamma, beta]).astype(jnp.float32)  # (3, D)
    if Dp != D:
        w_p = jnp.pad(w_p, ((0, 0), (0, Dp - D)))
        p_slab = jnp.pad(p_slab, ((0, 0), (0, Dp - D)))

    # Grid: sequence tiles OUTER, batch INNER -> the positional block index
    # (ss, 0) is constant across consecutive steps, so Pallas skips its re-DMA.
    grid = (Sp // ts, B)

    const_kw = ({"pipeline_mode": pl.Buffered(1)}
                if single_buffer_consts else {})

    in_specs = [
        pl.BlockSpec((None, ts, E), lambda ss, bb: (bb, ss, 0)),   # token rows
        pl.BlockSpec((ts, E),       lambda ss, bb: (ss, 0)),       # pos rows
    ]
    inputs = [tok_emb, pos_tab]
    if has_segment:
        in_specs += [
            pl.BlockSpec((None, ts, 1), lambda ss, bb: (bb, ss, 0)),  # seg ids
            pl.BlockSpec((3, E), lambda ss, bb: (0, 0), **const_kw),  # seg tab
        ]
        inputs += [seg_ids, seg_tab]
    in_specs += [
        pl.BlockSpec((E, Dp), lambda ss, bb: (0, 0), **const_kw),     # weight
        pl.BlockSpec((3, Dp), lambda ss, bb: (0, 0), **const_kw),     # b/g/beta
    ]
    inputs += [w_p, p_slab]

    out = pl.pallas_call(
        functools.partial(_embedding_kernel, d_valid=D,
                          has_segment=has_segment),
        out_shape=jax.ShapeDtypeStruct((B, Sp, Dp), out_dtype),
        grid_spec=pltpu.PrefetchScalarGridSpec(
            num_scalar_prefetch=0,
            grid=grid,
            in_specs=in_specs,
            out_specs=pl.BlockSpec((None, ts, Dp), lambda ss, bb: (bb, ss, 0)),
        ),
        compiler_params=pltpu.CompilerParams(
            dimension_semantics=("parallel", "parallel"),
            vmem_limit_bytes=_vmem_limit_bytes(ts, E, Dp, compute_dtype,
                                               single_buffer_consts),
        ),
    )(*inputs)

    if Sp == S and Dp == D:
        return out                      # aligned case: no extra HBM pass
    return out[:, :S, :D]


def transformer_embedding_forward(params, sequence, sequence_segment=None, *,
                                  seq_tile=512, compute_dtype=jnp.bfloat16,
                                  out_dtype=jnp.float32):
    """Pallas-backed forward of TransformerEmbedding (eval mode).

    sequence:         (B, S) int32 token ids
    sequence_segment: (B, S) int32 segment ids in [0, 3), or None
    returns:          (B, S, d_model) in out_dtype
    """
    return _forward(params, sequence, sequence_segment,
                    seq_tile=int(seq_tile), compute_dtype=compute_dtype,
                    out_dtype=out_dtype,
                    single_buffer_consts=_buffered_one_supported())


# --------------------------------------------------------------------------
# Parameter construction + pure-JAX reference (mirrors the PyTorch module)
# --------------------------------------------------------------------------
def make_sinusoidal_pe(max_len, d_model):
    pos = jnp.arange(max_len, dtype=jnp.float32)[:, None]
    i = jnp.arange(0, d_model, 2, dtype=jnp.float32)
    div = jnp.exp(-(jnp.log(10000.0) * i / d_model))
    ang = pos * div[None, :]
    pe = jnp.zeros((max_len, d_model), dtype=jnp.float32)
    pe = pe.at[:, 0::2].set(jnp.sin(ang))
    pe = pe.at[:, 1::2].set(jnp.cos(ang))
    return pe


def init_params(key, vocab_size, embed_size, d_model, pad_idx=0, max_len=512):
    k1, k2, k3, k4 = jax.random.split(key, 4)
    tok = jax.random.normal(k1, (vocab_size, embed_size), jnp.float32) * 0.02
    tok = tok.at[pad_idx].set(0.0)                 # nn.Embedding padding_idx
    seg = jax.random.normal(k2, (3, embed_size), jnp.float32) * 0.02
    seg = seg.at[pad_idx].set(0.0)
    w = jax.random.normal(k3, (embed_size, d_model), jnp.float32) * 0.05
    b = jax.random.normal(k4, (d_model,), jnp.float32) * 0.05
    return {
        "token_table": tok,
        "segment_table": seg,
        "pos_encoding": make_sinusoidal_pe(max_len, embed_size),
        "linear_w": w,
        "linear_b": b,
        "ln_gamma": jnp.ones((d_model,), jnp.float32),
        "ln_beta": jnp.zeros((d_model,), jnp.float32),
    }


def reference_forward(params, sequence, sequence_segment):
    """Pure-JAX reference mirroring the PyTorch forward (eval mode)."""
    B, S = sequence.shape
    x = jnp.take(params["token_table"], sequence, axis=0)
    x = x + params["pos_encoding"][:S][None, :, :]
    if sequence_segment is not None:
        x = x + jnp.take(params["segment_table"], sequence_segment, axis=0)
    y = x @ params["linear_w"] + params["linear_b"]
    mean = jnp.mean(y, axis=-1, keepdims=True)
    var = jnp.mean((y - mean) ** 2, axis=-1, keepdims=True)
    return (params["ln_gamma"] * (y - mean) / jnp.sqrt(var + LN_EPS)
            + params["ln_beta"])


if __name__ == "__main__":
    B, S = 2, 8
    vocab_size, embed_size, d_model = 32, 32, 48
    pad_idx, max_len = 0, 512

    key = jax.random.PRNGKey(0)
    kp, ks, kg, ks2, kg2 = jax.random.split(key, 5)

    params = init_params(kp, vocab_size, embed_size, d_model,
                         pad_idx=pad_idx, max_len=max_len)
    sequence = jax.random.randint(ks, (B, S), 0, vocab_size, dtype=jnp.int32)
    sequence_segment = jax.random.randint(kg, (B, S), 0, 3, dtype=jnp.int32)

    ref = reference_forward(params, sequence, sequence_segment)

    # 1) exact f32 path (tight check against the reference)
    out_f32 = transformer_embedding_forward(params, sequence, sequence_segment,
                                            compute_dtype=jnp.float32)
    out_f32 = jax.block_until_ready(out_f32)
    assert out_f32.shape == (B, S, d_model)
    assert jnp.allclose(out_f32, ref, atol=1e-4, rtol=1e-4), "f32 mismatch"

    # 2) default bf16-MXU path (looser tolerance vs f32 reference)
    out_bf16 = transformer_embedding_forward(params, sequence, sequence_segment)
    out_bf16 = jax.block_until_ready(out_bf16)
    assert out_bf16.shape == (B, S, d_model)
    assert jnp.allclose(out_bf16, ref, atol=5e-2, rtol=5e-2), "bf16 mismatch"

    # 3) bf16 OUTPUT path (halved write traffic)
    out_bo = transformer_embedding_forward(params, sequence, sequence_segment,
                                           out_dtype=jnp.bfloat16)
    out_bo = jax.block_until_ready(out_bo)
    assert out_bo.dtype == jnp.bfloat16
    assert jnp.allclose(out_bo.astype(jnp.float32), ref,
                        atol=7e-2, rtol=7e-2), "bf16-out mismatch"

    # 4) sequence_segment=None path + ragged S (exercises row/col padding and
    #    the segment-free kernel specialization)
    S2 = 10
    sequence2 = jax.random.randint(ks2, (B, S2), 0, vocab_size, dtype=jnp.int32)
    out_none = transformer_embedding_forward(params, sequence2, None,
                                             compute_dtype=jnp.float32)
    out_none = jax.block_until_ready(out_none)
    ref_none = reference_forward(params, sequence2, None)
    assert out_none.shape == (B, S2, d_model)
    assert jnp.allclose(out_none, ref_none, atol=1e-4, rtol=1e-4), \
        "segment=None mismatch"

    print("KERNEL_OK")
</pallas_src>

<mosaic_0001>
module attributes {stable_mosaic.version = 11 : i64} {
  func.func @_probe_kernel(%arg0: i32, %arg1: memref<8x128xf32, #tpu.memory_space<vmem>>, %arg2: memref<8x128xf32, #tpu.memory_space<vmem>>, %arg3: memref<8x128xf32, #tpu.memory_space<vmem>>) attributes {dimension_semantics = [#tpu.dimension_semantics<arbitrary>], iteration_bounds = array<i64: 2>, scalar_prefetch = 0 : i64, scratch_operands = 0 : i64, tpu.core_type = #tpu.core_type<tc>, window_params = [{pipeline_mode = #tpu.pipeline_mode<synchronous>, transform_indices = @transform_0, window_bounds = array<i64: 8, 128>}, {transform_indices = @transform_1, window_bounds = array<i64: 8, 128>}, {transform_indices = @transform_2, window_bounds = array<i64: 8, 128>}]} {
    %c0 = arith.constant 0 : index
    %c0_0 = arith.constant 0 : index
    %0 = vector.load %arg2[%c0, %c0_0] : memref<8x128xf32, #tpu.memory_space<vmem>>, vector<8x128xf32>
    %c0_1 = arith.constant 0 : index
    %c0_2 = arith.constant 0 : index
    %1 = vector.load %arg1[%c0_1, %c0_2] : memref<8x128xf32, #tpu.memory_space<vmem>>, vector<8x128xf32>
    %2 = arith.addf %0, %1 : vector<8x128xf32>
    %c0_3 = arith.constant 0 : index
    %c0_4 = arith.constant 0 : index
    %3 = vector.load %arg3[%c0_3, %c0_4] : memref<8x128xf32, #tpu.memory_space<vmem>>, vector<8x128xf32>
    tpu.vector_store %arg3[%c0_3, %c0_4], %2 {strides = array<i32>} : memref<8x128xf32, #tpu.memory_space<vmem>>, vector<8x128xf32>,
    return
  }
  func.func @transform_0(%arg0: i32) -> (i32, i32) {
    %c0_i32 = arith.constant 0 : i32
    %c0_i32_0 = arith.constant 0 : i32
    %c0_i32_1 = arith.constant 0 : i32
    return %c0_i32, %c0_i32_0 : i32, i32
  }
  func.func @transform_1(%arg0: i32) -> (i32, i32) {
    %c0_i32 = arith.constant 0 : i32
    %c0_i32_0 = arith.constant 0 : i32
    return %arg0, %c0_i32 : i32, i32
  }
  func.func @transform_2(%arg0: i32) -> (i32, i32) {
    %c0_i32 = arith.constant 0 : i32
    %c0_i32_0 = arith.constant 0 : i32
    return %arg0, %c0_i32 : i32, i32
  }
}

module attributes {stable_mosaic.version = 11 : i64} {
  func.func @_embedding_kernel(%arg0: i32, %arg1: i32, %arg2: memref<1x8x32xf32, #tpu.memory_space<vmem>>, %arg3: memref<8x32xf32, #tpu.memory_space<vmem>>, %arg4: memref<1x8x1xi32, #tpu.memory_space<vmem>>, %arg5: memref<3x32xf32, #tpu.memory_space<vmem>>, %arg6: memref<32x128xf32, #tpu.memory_space<vmem>>, %arg7: memref<3x128xf32, #tpu.memory_space<vmem>>, %arg8: memref<1x8x128xf32, #tpu.memory_space<vmem>>) attributes {dimension_semantics = [#tpu.dimension_semantics<parallel>, #tpu.dimension_semantics<parallel>], iteration_bounds = array<i64: 1, 2>, scalar_prefetch = 0 : i64, scratch_operands = 0 : i64, tpu.core_type = #tpu.core_type<tc>, window_params = [{transform_indices = @transform_0, window_bounds = array<i64: 1, 8, 32>}, {transform_indices = @transform_1, window_bounds = array<i64: 8, 32>}, {transform_indices = @transform_2, window_bounds = array<i64: 1, 8, 1>}, {pipeline_mode = #tpu.pipeline_mode<synchronous>, transform_indices = @transform_3, window_bounds = array<i64: 3, 32>}, {pipeline_mode = #tpu.pipeline_mode<synchronous>, transform_indices = @transform_4, window_bounds = array<i64: 32, 128>}, {pipeline_mode = #tpu.pipeline_mode<synchronous>, transform_indices = @transform_5, window_bounds = array<i64: 3, 128>}, {transform_indices = @transform_6, window_bounds = array<i64: 1, 8, 128>}]} {
    %c0 = arith.constant 0 : index
    %c0_0 = arith.constant 0 : index
    %c0_1 = arith.constant 0 : index
    %0 = vector.load %arg2[%c0, %c0_0, %c0_1] : memref<1x8x32xf32, #tpu.memory_space<vmem>>, vector<1x8x32xf32>
    %1 = vector.shape_cast %0 : vector<1x8x32xf32> to vector<8x32xf32>
    %c0_2 = arith.constant 0 : index
    %c0_3 = arith.constant 0 : index
    %2 = vector.load %arg3[%c0_2, %c0_3] : memref<8x32xf32, #tpu.memory_space<vmem>>, vector<8x32xf32>
    %3 = arith.addf %1, %2 : vector<8x32xf32>
    %c0_4 = arith.constant 0 : index
    %c0_5 = arith.constant 0 : index
    %c0_6 = arith.constant 0 : index
    %4 = vector.load %arg4[%c0_4, %c0_5, %c0_6] : memref<1x8x1xi32, #tpu.memory_space<vmem>>, vector<1x8x1xi32>
    %5 = vector.shape_cast %4 : vector<1x8x1xi32> to vector<8x1xi32>
    %c0_7 = arith.constant 0 : index
    %c0_8 = arith.constant 0 : index
    %6 = vector.load %arg5[%c0_7, %c0_8] : memref<3x32xf32, #tpu.memory_space<vmem>>, vector<3x32xf32>
    %7 = vector.extract_strided_slice %6 {offsets = [0, 0], sizes = [1, 32], strides = [1, 1]} : vector<3x32xf32> to vector<1x32xf32>
    %8 = vector.extract_strided_slice %6 {offsets = [1, 0], sizes = [1, 32], strides = [1, 1]} : vector<3x32xf32> to vector<1x32xf32>
    %9 = vector.extract_strided_slice %6 {offsets = [2, 0], sizes = [1, 32], strides = [1, 1]} : vector<3x32xf32> to vector<1x32xf32>
    %c1_i32 = arith.constant 1 : i32
    %10 = vector.broadcast %c1_i32 : i32 to vector<8x1xi32>
    %11 = arith.cmpi eq, %5, %10 : vector<8x1xi32>
    %c2_i32 = arith.constant 2 : i32
    %12 = vector.broadcast %c2_i32 : i32 to vector<8x1xi32>
    %13 = arith.cmpi eq, %5, %12 : vector<8x1xi32>
    %14 = vector.shape_cast %13 : vector<8x1xi1> to vector<8x1xi1>
    %15 = vector.broadcast %14 : vector<8x1xi1> to vector<8x32xi1>
    %16 = vector.shape_cast %9 : vector<1x32xf32> to vector<1x32xf32>
    %17 = vector.broadcast %16 : vector<1x32xf32> to vector<8x32xf32>
    %18 = vector.shape_cast %7 : vector<1x32xf32> to vector<1x32xf32>
    %19 = vector.broadcast %18 : vector<1x32xf32> to vector<8x32xf32>
    %20 = arith.select %15, %17, %19 : vector<8x32xi1>, vector<8x32xf32>
    %21 = vector.shape_cast %11 : vector<8x1xi1> to vector<8x1xi1>
    %22 = vector.broadcast %21 : vector<8x1xi1> to vector<8x32xi1>
    %23 = vector.shape_cast %8 : vector<1x32xf32> to vector<1x32xf32>
    %24 = vector.broadcast %23 : vector<1x32xf32> to vector<8x32xf32>
    %25 = arith.select %22, %24, %20 : vector<8x32xi1>, vector<8x32xf32>
    %26 = arith.addf %3, %25 : vector<8x32xf32>
    %c0_9 = arith.constant 0 : index
    %c0_10 = arith.constant 0 : index
    %27 = vector.load %arg6[%c0_9, %c0_10] : memref<32x128xf32, #tpu.memory_space<vmem>>, vector<32x128xf32>
    %cst = arith.constant dense<0.000000e+00> : vector<8x128xf32>
    %28 = tpu.matmul %26, %27, %cst {dimension_numbers = #tpu.dot_dimension_numbers<[1], [0], [0], [1], [0, 0, 1, 1], [], []>} : vector<8x32xf32>, vector<32x128xf32>, vector<8x128xf32> -> vector<8x128xf32>
    %c0_11 = arith.constant 0 : index
    %c0_12 = arith.constant 0 : index
    %29 = vector.load %arg7[%c0_11, %c0_12] : memref<3x128xf32, #tpu.memory_space<vmem>>, vector<1x128xf32>
    %c1 = arith.constant 1 : index
    %c0_13 = arith.constant 0 : index
    %30 = vector.load %arg7[%c1, %c0_13] : memref<3x128xf32, #tpu.memory_space<vmem>>, vector<1x128xf32>
    %c2 = arith.constant 2 : index
    %c0_14 = arith.constant 0 : index
    %31 = vector.load %arg7[%c2, %c0_14] : memref<3x128xf32, #tpu.memory_space<vmem>>, vector<1x128xf32>
    %32 = vector.broadcast %29 : vector<1x128xf32> to vector<8x128xf32>
    %33 = arith.addf %28, %32 : vector<8x128xf32>
    %cst_15 = arith.constant dense<0.000000e+00> : vector<8xf32>
    %34 = vector.multi_reduction <add>, %33, %cst_15 [1] : vector<8x128xf32> to vector<8xf32>
    %35 = vector.shape_cast %34 : vector<8xf32> to vector<8x1xf32>
    %cst_16 = arith.constant 0.020833334 : f32
    %36 = vector.broadcast %cst_16 : f32 to vector<8x1xf32>
    %37 = arith.mulf %35, %36 : vector<8x1xf32>
    %38 = arith.mulf %33, %33 : vector<8x128xf32>
    %cst_17 = arith.constant dense<0.000000e+00> : vector<8xf32>
    %39 = vector.multi_reduction <add>, %38, %cst_17 [1] : vector<8x128xf32> to vector<8xf32>
    %40 = vector.shape_cast %39 : vector<8xf32> to vector<8x1xf32>
    %cst_18 = arith.constant 0.020833334 : f32
    %41 = vector.broadcast %cst_18 : f32 to vector<8x1xf32>
    %42 = arith.mulf %40, %41 : vector<8x1xf32>
    %43 = arith.mulf %37, %37 : vector<8x1xf32>
    %44 = arith.subf %42, %43 : vector<8x1xf32>
    %cst_19 = arith.constant 0.000000e+00 : f32
    %45 = vector.broadcast %cst_19 : f32 to vector<8x1xf32>
    %46 = arith.maximumf %44, %45 : vector<8x1xf32>
    %47 = vector.broadcast %37 : vector<8x1xf32> to vector<8x128xf32>
    %48 = arith.subf %33, %47 : vector<8x128xf32>
    %cst_20 = arith.constant 9.99999974E-6 : f32
    %49 = vector.broadcast %cst_20 : f32 to vector<8x1xf32>
    %50 = arith.addf %46, %49 : vector<8x1xf32>
    %51 = math.rsqrt %50 : vector<8x1xf32>
    %52 = vector.broadcast %51 : vector<8x1xf32> to vector<8x128xf32>
    %53 = arith.mulf %48, %52 : vector<8x128xf32>
    %54 = vector.broadcast %30 : vector<1x128xf32> to vector<8x128xf32>
    %55 = arith.mulf %53, %54 : vector<8x128xf32>
    %56 = vector.broadcast %31 : vector<1x128xf32> to vector<8x128xf32>
    %57 = arith.addf %55, %56 : vector<8x128xf32>
    %c0_21 = arith.constant 0 : index
    %c0_22 = arith.constant 0 : index
    %c0_23 = arith.constant 0 : index
    %58 = vector.load %arg8[%c0_21, %c0_22, %c0_23] : memref<1x8x128xf32, #tpu.memory_space<vmem>>, vector<1x8x128xf32>
    %59 = vector.shape_cast %58 : vector<1x8x128xf32> to vector<8x128xf32>
    %60 = vector.shape_cast %57 : vector<8x128xf32> to vector<1x8x128xf32>
    tpu.vector_store %arg8[%c0_21, %c0_22, %c0_23], %60 {strides = array<i32>} : memref<1x8x128xf32, #tpu.memory_space<vmem>>, vector<1x8x128xf32>,
    return
  }
  func.func @transform_0(%arg0: i32, %arg1: i32) -> (i32, i32, i32) {
    %c0_i32 = arith.constant 0 : i32
    %c0_i32_0 = arith.constant 0 : i32
    return %arg1, %arg0, %c0_i32 : i32, i32, i32
  }
  func.func @transform_1(%arg0: i32, %arg1: i32) -> (i32, i32) {
    %c0_i32 = arith.constant 0 : i32
    %c0_i32_0 = arith.constant 0 : i32
    return %arg0, %c0_i32 : i32, i32
  }
  func.func @transform_2(%arg0: i32, %arg1: i32) -> (i32, i32, i32) {
    %c0_i32 = arith.constant 0 : i32
    %c0_i32_0 = arith.constant 0 : i32
    return %arg1, %arg0, %c0_i32 : i32, i32, i32
  }
  func.func @transform_3(%arg0: i32, %arg1: i32) -> (i32, i32) {
    %c0_i32 = arith.constant 0 : i32
    %c0_i32_0 = arith.constant 0 : i32
    %c0_i32_1 = arith.constant 0 : i32
    return %c0_i32, %c0_i32_0 : i32, i32
  }
  func.func @transform_4(%arg0: i32, %arg1: i32) -> (i32, i32) {
    %c0_i32 = arith.constant 0 : i32
    %c0_i32_0 = arith.constant 0 : i32
    %c0_i32_1 = arith.constant 0 : i32
    return %c0_i32, %c0_i32_0 : i32, i32
  }
  func.func @transform_5(%arg0: i32, %arg1: i32) -> (i32, i32) {
    %c0_i32 = arith.constant 0 : i32
    %c0_i32_0 = arith.constant 0 : i32
    %c0_i32_1 = arith.constant 0 : i32
    return %c0_i32, %c0_i32_0 : i32, i32
  }
  func.func @transform_6(%arg0: i32, %arg1: i32) -> (i32, i32, i32) {
    %c0_i32 = arith.constant 0 : i32
    %c0_i32_0 = arith.constant 0 : i32
    return %arg1, %arg0, %c0_i32 : i32, i32, i32
  }
}

</mosaic_0001>

<bundles_post_ra>
// kernel: tpu_custom_call.1
= control target key start
LH: loop header
LB: loop body
LE: loop exit
PB: predicated region body
PF: predicated region fallthrough
CT: control target
= control target key end

     0   :  { %7 = vsyncpa [#allocation3], 0  ;;  %s635_s0 = inlined_call_operand.hbm [shape: f32[8,128], index: 0, kind: input, shape index: {}]   ;;  %s636_s1 = inlined_call_operand.hbm [shape: f32[16,128], index: 1, kind: input, shape index: {}]   ;;  %s637_s2 = inlined_call_operand.hbm [shape: f32[16,128], index: 2, kind: output, shape index: {}]  }
   0x1   :  { %8 = vsyncpa [#allocation6], 0 }
   0x2   :  { %10 = vsyncpa [#allocation6 + $0x1], 0 }
   0x3   :  { %11 = vsyncpa [#allocation4], 0 }
   0x4   :  { %13 = vsyncpa [#allocation4 + $0x1], 0  ;;  %s497_s9 = smov 0   ;;  %s499_s10 = smov 0  }
   0x5   :  { %s501_s11 = smov 0   ;;  %s503_s12 = smov 0  }
   0x6 LB: > { %s518_s13 = sadd.s32 4294967295, %s479_s12   ;;  %s278_s14 = sadd.s32 4294967294, %s479_s12   ;;  %s479_s12 = sphi %s503_s12, %s647_s12   ;;  %s475_s11 = sphi %s501_s11, %s646_s11   ;;  %s471_s10 = sphi %s499_s10, %s645_s10   ;;  %s467_s9 = sphi %s497_s9, %s644_s9  }
   0x7   : > { %p60_p0 = scmp.ne.s32.totalorder %s471_s10, %s467_s9  ;;  %p61_p1 = scmp.eq.s32.totalorder %s518_s13, 0 }
   0x8   : > { %p84_p2 = scmp.eq.s32.totalorder %s518_s13, 1  ;;  %p90_p3 = scmp.eq.s32.totalorder %s278_s14, 1 }
   0x9   : > { %p527_p4 = por %p61_p1, %p60_p0  ;;  %p279_p5 = scmp.ge.s32.totalorder %s479_s12, 1 }
   0xa   : > { %p532_p6 = por %p90_p3, %p60_p0  ;;  %p97_p7 = scmp.lt.s32.totalorder %s479_s12, 3 }
   0xb   : > { %s109_s19 = sshll.u32 %s635_s0, 4  ;;  %s481_s21 = smov [#allocation2]   ;;  %s110_s19 = int_to_ptr.hbm [resolvable:$true] %s109_s19 }
   0xc   : > { %p540_p8 = pnand %p279_p5, %p97_p7  ;;  %s111_s22 = sshll.u32 %s481_s21, 4  ;;  %s112_s22 = int_to_ptr.vmem [resolvable:$true] %s111_s22 }
   0xd   : > { %s550_s23 = sadd.s32 1, %s479_s12   ;;  %s47_s24 = sadd.s32 1, %s475_s11 }
   0xe   : > { %p300_p10 = pneg %p540_p8  ;;  %s44_s25 = ssub.s32 %s479_s12, %s550_s23 }
   0xf   : > { %p45_p12 = scmp.eq.s32.totalorder %s44_s25, 0  ;;  %p54_p13 = scmp.ne.s32.totalorder %s475_s11, %s471_s10 }
  0x10   : > { %p301_p11 = pnand %p300_p10, %p61_p1  ;;  %p55_p0 = scmp.eq.s32.totalorder %s479_s12, 0 }
  0x11   : > { %s559_s26 = scalar_select %p45_p12, %s475_s11, %s47_s24  }
  0x12   : > { %303 = dma.hbm_to_vmem [thread:$0]  (!%p301_p11), %s110_s19, 128, %s112_s22, [#allocation3]  }
  0x13   : > { %p563_p3 = por %p84_p2, %p54_p13  ;;  %p313_p5 = scmp.lt.s32.totalorder %s479_s12, 2 }
  0x14   : > { %s122_s28 = sand.u32 1, %s475_s11   ;;  %s283_s29 = sshll.u32 %s479_s12, 3 }
  0x15   : > { %p56_p7 = por %p55_p0, %p54_p13  ;;  %s282_s30 = sshll.u32 %s122_s28, 3 }
  0x16   : > { %s130_s5 = scalar_lea.hbm %s636_s1, %s283_s29  ;;  %s126_s7 = scalar_lea.vmem [#allocation5], %s282_s30 }
  0x17   : > { %s132_s6 = sshll.u32 %s130_s5, 4  ;;  %s134_s8 = sshll.u32 %s126_s7, 4  ;;  %s133_s6 = int_to_ptr.hbm [resolvable:$true] %s132_s6  ;;  %s135_s8 = int_to_ptr.vmem [resolvable:$true] %s134_s8 }
  0x18   : > { %p573_p10 = pnand %p313_p5, %p56_p7  ;;  %s123_s17 = scalar_lea.sflag [#allocation6], %s122_s28 }
  0x19   : > { %s379_s18 = sshra.s32 %s133_s6, 4  ;;  %s386_s24 = scalar_lea.hbm %s636_s1, 16  ;;  %s380_s18 = int_to_ptr.hbm [resolvable:$true] %s379_s18 }
  0x1a   : > { %s381_s19 = scalar_lea.hbm %s380_s18, 8  ;;  %p383_p11 = pneg %p573_p10 }
  0x1b   : > { %p382_p2 = scmp.ne.s32.totalorder %s380_s18, %s381_s19  ;;  %p387_p0 = scmp.lt.s32.totalorder %s380_s18, %s636_s1 }
  0x1c   : > { %p388_p5 = scmp.lt.s32.totalorder %s386_s24, %s381_s19 }
  0x1d   : > { %p384_p12 = pnand %p383_p11, %p382_p2 }
  0x1e   : > { %p389_p7 = por %p388_p5, %p387_p0 }
  0x1f   : > { %p385_p13 = pneg %p384_p12 }
  0x21   : > { %p390_p9 = pnand %p389_p7, %p385_p13 }
  0x23   : > { %393 = shalt.err (!%p390_p9)
}
  0x24   : > { %307 = dma.hbm_to_vmem [thread:$0]  (!%p573_p10), %s133_s6, 128, %s135_s8, %s123_s17  }
  0x25   : > { %143 = sbr.rel (%p540_p8) target bundleno = 62 (0x3e), region = 28 }
  0x2a   : > { %454 = dma.done.wait (%p61_p1), [#allocation3], 128  }
  0x2b   : > { %456 = vsyncadd (%p61_p1), [#allocation3], 4294967168  ;;  %s594_s28 = sand.u32 1, %s471_s10  }
  0x2c   : > { %s286_s30 = sshll.u32 %s594_s28, 3  ;;  %s151_s3 = scalar_lea.sflag [#allocation6], %s594_s28 }
  0x2d   : > { %s154_s4 = scalar_lea.vmem [#allocation5], %s286_s30 }
  0x2e   : > { %458 = dma.done.wait (%p527_p4), %s151_s3, 128  }
  0x2f   : > { %460 = vsyncadd (%p527_p4), %s151_s3, 4294967168  ;;  %s289_s20 = sshll.u32 %s518_s13, 3  ;;  %s175_s8 = scalar_lea.vmem [#allocation7], %s286_s30  ;;  %v176_v0 = vld [vmem:[%s154_s4] sm:$0xff]  ;;  %v177_v1 = vld [vmem:[#allocation2] sm:$0xff] }
  0x30   : > { %s191_s7 = scalar_lea.hbm %s637_s2, %s289_s20  ;;  %s193_s14 = sshll.u32 %s175_s8, 4  ;;  %v178_v2 = vadd.f32 %v177_v1, %v176_v0  ;;  %s194_s14 = int_to_ptr.vmem [resolvable:$true] %s193_s14 }
  0x31   : > { %s195_s17 = sshll.u32 %s191_s7, 4  ;;  %s181_s18 = scalar_lea.sflag [#allocation4], %s594_s28  ;;  %s196_s17 = int_to_ptr.hbm [resolvable:$true] %s195_s17 }
  0x32   : > { %179 = vst [vmem:[%s175_s8] sm:$0xff] %v178_v2  ;;  %s423_s15 = sshra.s32 %s196_s17, 4  ;;  %s429_s22 = scalar_lea.hbm %s637_s2, 16  ;;  %s424_s15 = int_to_ptr.hbm [resolvable:$true] %s423_s15 }
  0x33   : > { %s425_s19 = scalar_lea.hbm %s424_s15, 8  ;;  %p430_p9 = scmp.lt.s32.totalorder %s424_s15, %s637_s2 }
  0x34   : > { %p426_p1 = scmp.ne.s32.totalorder %s424_s15, %s425_s19  ;;  %p431_p10 = scmp.lt.s32.totalorder %s429_s22, %s425_s19 }
  0x36   : > { %p427_p4 = pnand %p426_p1, %p563_p3  ;;  %p432_p2 = por %p431_p10, %p430_p9 }
  0x38   : > { %p428_p8 = pneg %p427_p4 }
  0x3a   : > { %p433_p11 = pnand %p432_p2, %p428_p8 }
  0x3c   : > { %436 = shalt.err (!%p433_p11)
}
  0x3d   : > { %298 = dma.vmem_to_hbm [thread:$0]  (%p563_p3), %s194_s14, 128, %s196_s17, %s181_s18  }
  0x3e PF: > { %s207_s29 = sand.u32 1, %s467_s9   ;;  %p643_p12 = scmp.ge.s32.totalorder %s479_s12, 2 }
  0x3f   : > { %s208_s28 = scalar_lea.sflag [#allocation4], %s207_s29 }
  0x40   : > { %p309_p13 = pnand %p643_p12, %p532_p6 }
  0x42   : > { %p310_p0 = pneg %p309_p13 }
  0x44   : > { %462 = dma.done.wait (%p310_p0), %s208_s28, 128  }
  0x45   : > { %464 = vsyncadd (%p310_p0), %s208_s28, 4294967168  ;;  %p16_p5 = scmp.ge.s32.totalorder %s550_s23, 4   ;;  %s644_s9 = smov %s471_s10 }
  0x46   : > { %s645_s10 = smov %s475_s11  ;;  %s646_s11 = smov %s559_s26 }
  0x47   : > { %s647_s12 = smov %s550_s23  ;;  %18 = sbr.rel (!%p16_p5) target bundleno = 6 (0x6), region = 78 }
  0x4c   :  { %214 = vsyncpa [#allocation3], 1 }
  0x4d   :  { %216 = vsyncpa [#allocation3 + $0x1], 1 }
  0x4e   :  { %217 = vsyncpa [#allocation6], 1 }
  0x4f   :  { %219 = vsyncpa [#allocation6 + $0x1], 1 }
  0x50   :  { %220 = vsyncpa [#allocation4], 1 }
  0x51   :  { %222 = vsyncpa [#allocation4 + $0x1], 1 }

// kernel: _forward.1
= control target key start
LH: loop header
LB: loop body
LE: loop exit
PB: predicated region body
PF: predicated region fallthrough
CT: control target
= control target key end

     0   :  { %11 = vsyncpa [#allocation3], 0  ;;  %s837_s0 = inlined_call_operand.vmem [shape: f32[2,8,32], index: 0, kind: input, shape index: {}]   ;;  %s838_s1 = inlined_call_operand.vmem [shape: f32[8,32], index: 1, kind: input, shape index: {}]   ;;  %s839_s2 = inlined_call_operand.vmem [shape: s32[2,8,1], index: 2, kind: input, shape index: {}]   ;;  %s840_s3 = inlined_call_operand.vmem [shape: f32[3,32], index: 3, kind: input, shape index: {}]   ;;  %s841_s4 = inlined_call_operand.vmem [shape: f32[32,128], index: 4, kind: input, shape index: {}]   ;;  %s842_s5 = inlined_call_operand.vmem [shape: f32[3,128], index: 5, kind: input, shape index: {}]   ;;  %s843_s6 = inlined_call_operand.hbm [shape: f32[2,8,128], index: 6, kind: output, shape index: {}]  }
   0x1   :  { %13 = vsyncpa [#allocation3 + $0x1], 0  ;;  %s710_s21 = smov 0   ;;  %s712_s22 = smov 0  }
   0x2   :  { %s714_s23 = smov 0   ;;  %s716_s24 = smov 0  }
   0x3   :  { %s718_s25 = smov 0   ;;  %s720_s26 = smov 0  }
   0x4 LB: > { %s518_s27 = sadd.s32 4294967295, %s672_s26   ;;  %s519_s28 = sadd.s32 4294967294, %s672_s26   ;;  %s672_s26 = sphi %s720_s26, %s19_s26   ;;  %s668_s25 = sphi %s718_s25, %s850_s25   ;;  %s664_s24 = sphi %s716_s24, %s849_s24   ;;  %s660_s23 = sphi %s714_s23, %s848_s23   ;;  %s656_s22 = sphi %s712_s22, %s847_s22   ;;  %s652_s21 = sphi %s710_s21, %s846_s21  }
   0x5   : > { %s28_s29 = sadd.s32 1, %s668_s25  ;;  %s185_s30 = sadd.s32 1, %s660_s23 }
   0x6   : > { %p29_p0 = scmp.ge.s32.totalorder %s28_s29, 2  ;;  %p195_p1 = scmp.ne.s32.totalorder %s660_s23, %s656_s22 }
   0x7   : > { %p196_p2 = scmp.eq.s32.totalorder %s518_s27, 1  ;;  %p201_p3 = scmp.ne.s32.totalorder %s656_s22, %s652_s21 }
   0x8   : > { %s852_s29 = smov (%p29_p0, %s28_s29), 0  ;;  %p202_p5 = scmp.eq.s32.totalorder %s519_s28, 1 }
   0x9   : > { %p750_p4 = por %p196_p2, %p195_p1  ;;  %s180_s8 = ssub.s32 %s668_s25, %s852_s29 }
   0xa   : > { %p523_p6 = scmp.ge.s32.totalorder %s672_s26, 1  ;;  %p183_p7 = scmp.eq.s32.totalorder %s180_s8, 0 }
   0xb   : > { %p757_p8 = por %p202_p5, %p201_p3  ;;  %p256_p9 = scmp.lt.s32.totalorder %s672_s26, 3 }
   0xc   : > { %s763_s10 = scalar_select %p183_p7, %s660_s23, %s185_s30  }
   0xd   : > { %p257_p10 = pnand %p523_p6, %p256_p9 }
   0xe   : > { %p299_p11 = scmp.lt.s32.totalorder (!%p257_p10), %s664_s24, 1  ;;  %s296_s19 = sand.u32 (!%p257_p10), 1, %s656_s22  }
   0xf   : > { %260 = sbr.rel (%p257_p10) target bundleno = 441 (0x1b9), region = 44  ;;  %s524_s20 = sshll.u32 (!%p257_p10), %s296_s19, 3 }
  0x10   : > { %s529_s27 = sshll.u32 (!%p257_p10), %s664_s24, 3  ;;  %s614_s8 = scalar_lea.hbm (!%p257_p10), %s843_s6, 16 }
  0x14   : > { %v674_v0 = vmov 0   ;;  %s300_s11 = scalar_select %p299_p11, %s664_s24, 1  ;;  %v343_v4 = vld [vmem:[%s841_s4 + $0x18] sm:$0xff]  ;;  %v342_v5 = vld [vmem:[%s841_s4 + $0x10] sm:$0xff]  ;;  %v341_v6 = vld [vmem:[%s841_s4 + $0x8] sm:$0xff]  ;;  %vm348_vm4 = vcmask 261120  }
  0x15   : > { %588 = vset.pattern.permute.xlu0 %v674_v0  ;;  %364 = vmatpush.msra.mxu0 %v343_v4  ;;  %v340_v7 = vld [vmem:[%s841_s4] sm:$0xff]  ;;  %s298_s24 = scalar_lea.vmem [#allocation2], %s524_s20 }
  0x16   : > { %s525_s12 = sshll.u32 %s300_s11, 3  ;;  %v321_v9 = vld [vmem:[%s840_s3] sm:$0x7]  ;;  %s414_s16 = sshll.u32 %s298_s24, 4  ;;  %s415_s16 = int_to_ptr.vmem [resolvable:$true] %s414_s16 }
  0x17   : > { %s316_s15 = scalar_lea.vmem %s839_s2, %s525_s12  ;;  %365 = vmatpush.msra.mxu0 %v342_v5  ;;  %s305_s13 = scalar_lea.vmem %s837_s0, %s525_s12  ;;  %v318_v11 = vld [vmem:[%s838_s1] sm:$0xff]  ;;  %v329_v12 = vperm.slane %v321_v9, 2  ;;  %v330_v13 = vperm.slane %v321_v9, 0  ;;  %v337_v14 = vperm.slane %v321_v9, 1 }
  0x18   : > { %v320_v1 = vld [vmem:[%s316_s15] sm:$0xff]  ;;  %s401_s12 = scalar_lea.sflag [#allocation3], %s296_s19 }
  0x19   : > { %vm323_vm0 = vcmp.eq.s32.totalorder %v320_v1, 2  ;;  %vm322_vm1 = vcmp.eq.s32.totalorder %v320_v1, 1  ;;  %366 = vmatpush.msra.mxu0 %v341_v6  ;;  %v317_v10 = vld [vmem:[%s305_s13] sm:$0xff]  ;;  %s412_s13 = scalar_lea.hbm %s843_s6, %s529_s27 }
  0x1a   : > { %v324_v2 = vsel %vm323_vm0, 1, %v674_v0  ;;  %v332_v3 = vsel %vm322_vm1, 1, %v674_v0  ;;  %v319_v15 = vadd.f32 %v318_v11, %v317_v10  ;;  %v589_v20 = vld [vmem:[%s842_s5] ss:$0 sm:$0xff]  ;;  %v590_v39 = vld [vmem:[%s842_s5 + $0x1] ss:$0 sm:$0xff] }
  0x1b   : > { %326 = vperm.xlu0 %588, %v324_v2   ;;  %367 = vmatpush.msra.mxu0 %v340_v7  ;;  %v591_v42 = vld [vmem:[%s842_s5 + $0x2] ss:$0 sm:$0xff]  ;;  %s416_s17 = sshll.u32 %s412_s13, 4  ;;  %s417_s17 = int_to_ptr.hbm [resolvable:$true] %s416_s17 }
  0x1c   : > { %s608_s18 = sshra.s32 %s417_s17, 4  ;;  %s609_s18 = int_to_ptr.hbm [resolvable:$true] %s608_s18 }
  0x1d   : > { %s610_s28 = scalar_lea.hbm %s609_s18, 8  ;;  %p615_p1 = scmp.lt.s32.totalorder %s609_s18, %s843_s6 }
  0x1e   : > { %p611_p12 = scmp.ne.s32.totalorder %s609_s18, %s610_s28  ;;  %p616_p2 = scmp.lt.s32.totalorder %s614_s8, %s610_s28 }
  0x20   : > { %p612_p13 = pnand %p611_p12, %p750_p4  ;;  %p617_p3 = por %p616_p2, %p615_p1 }
  0x22   : > { %p613_p0 = pneg %p612_p13 }
  0x23   : > { %334 = vperm.xlu0 %588, %v332_v3  }
  0x24   : > { %p618_p5 = pnand %p617_p3, %p613_p0 }
  0x8d   : > { %v327_v8 = vpop.permute.xlu0 %326 }
  0x8e   : > { %vm328_vm2 = vcmp.eq.s32.totalorder %v327_v8, 1 }
  0x8f   : > { %v331_v17 = vsel %vm328_vm2, %v329_v12, %v330_v13 }
  0x95   : > { %v335_v16 = vpop.permute.xlu0 %334 }
  0x96   : > { %vm336_vm3 = vcmp.eq.s32.totalorder %v335_v16, 1 }
  0x97   : > { %v338_v18 = vsel %vm336_vm3, %v337_v14, %v331_v17 }
  0x98   : > { %v339_v19 = vadd.f32 %v338_v18, %v319_v15 }
  0x9a   : > { %527 = vmatmul.msk.f32.vlgmr.msra.gmra.mxu0 %vm348_vm4, %v339_v19 }
 0x117   : > { %v369_v21 = vpop.f32.mrf.mxu0 }
 0x118   : > { %v370_v22 = vadd.f32 %v589_v20, %v369_v21 }
 0x11a   : > { %372 = vadd.xlane.f32.xlu1 %v370_v22  ;;  %v375_v23 = vmul.f32 %v370_v22, %v370_v22 }
 0x122   : > { %376 = vadd.xlane.f32.xlu1 %v375_v23 }
 0x18d   : > { %v373_v24 = vpop.xlane.xlu1 %372 }
 0x18e   : > { %v374_v25 = vmul.f32 0.020833334, %v373_v24 }
 0x190   : > { %v379_v27 = vmul.f32 %v374_v25, %v374_v25  ;;  %v382_v38 = vsub.f32 %v370_v22, %v374_v25 }
 0x195   : > { %v377_v26 = vpop.xlane.xlu1 %376 }
 0x196   : > { %v378_v28 = vmul.f32 0.020833334, %v377_v26 }
 0x198   : > { %v380_v29 = vsub.f32 %v378_v28, %v379_v27 }
 0x19a   : > { %v381_v30 = vmax.f32 %v380_v29, 0.0 }
 0x19c   : > { %v383_v31 = vadd.f32 1e-05, %v381_v30 }
 0x19e   : > { %592 = vrsqrt.f32 %v383_v31  ;;  %vm390_vm6 = vweird.f32 %v383_v31 }
 0x1a4   : > { %v593_v32 = vpop.eup %592 }
 0x1a5   : > { %v385_v33 = vmul.f32 %v593_v32, %v383_v31  ;;  %vm391_vm5 = vweird.f32 %v593_v32 }
 0x1a6   : > { %vm392_vm7 = vmor %vm390_vm6, %vm391_vm5 }
 0x1a7   : > { %v386_v34 = vmul.f32 %v593_v32, %v385_v33 }
 0x1a9   : > { %v387_v35 = vmul.f32 0.5, %v386_v34 }
 0x1ab   : > { %v388_v36 = vsub.f32 1.5, %v387_v35 }
 0x1ad   : > { %v389_v37 = vmul.f32 %v593_v32, %v388_v36 }
 0x1af   : > { %v393_v40 = vsel %vm392_vm7, %v593_v32, %v389_v37 }
 0x1b0   : > { %v394_v41 = vmul.f32 %v393_v40, %v382_v38 }
 0x1b2   : > { %v396_v43 = vmul.f32 %v590_v39, %v394_v41 }
 0x1b4   : > { %v398_v44 = vadd.f32 %v591_v42, %v396_v43 }
 0x1b6   : > { %399 = vst [vmem:[%s298_s24] sm:$0xff] %v398_v44 }
 0x1b7   : > { %621 = shalt.err (!%p618_p5)
}
 0x1b8   : > { %532 = dma.vmem_to_hbm [thread:$0]  (%p750_p4), %s415_s16, 128, %s417_s17, %s401_s12  }
 0x1b9 PF: > { %p538_p6 = scmp.ge.s32.totalorder %s672_s26, 2  ;;  %s428_s19 = sand.u32 1, %s652_s21  }
 0x1ba   : > { %s429_s13 = scalar_lea.sflag [#allocation3], %s428_s19 }
 0x1bb   : > { %p535_p7 = pnand %p538_p6, %p757_p8 }
 0x1bd   : > { %p536_p9 = pneg %p535_p7 }
 0x1bf   : > { %647 = dma.done.wait (%p536_p9), %s429_s13, 128  }
 0x1c0   : > { %649 = vsyncadd (%p536_p9), %s429_s13, 4294967168  ;;  %s19_s26 = sadd.s32 1, %s672_s26   ;;  %s846_s21 = smov %s656_s22 }
 0x1c1   : > { %p16_p10 = scmp.ge.s32.totalorder %s19_s26, 4   ;;  %s847_s22 = smov %s660_s23 }
 0x1c2   : > { %s848_s23 = smov %s763_s10  ;;  %s849_s24 = smov %s668_s25 }
 0x1c3   : > { %s850_s25 = smov %s852_s29  ;;  %18 = sbr.rel (!%p16_p10) target bundleno = 4 (0x4), region = 85 }
 0x1c8   :  { %435 = vsyncpa [#allocation3], 1 }
 0x1c9   :  { %437 = vsyncpa [#allocation3 + $0x1], 1 }

</bundles_post_ra>
